<compile_context>
chip_gen: v6e
topology: v6e:2x2x1
jax: 0.10.0
libtpu: 0.0.40
codegen_flags: <defaults>
</compile_context>

<pallas_src>
import functools

import jax
import jax.numpy as jnp
from jax.experimental import pallas as pl
from jax.experimental.pallas import tpu as pltpu


def czring_kernel(st_re_ref, st_im_ref, out_re_ref, out_im_ref, *,
                  n_wires, tile_d):
    # Basis index of each lane in this column tile.
    col = (pl.program_id(1) * tile_d
           + jax.lax.broadcasted_iota(jnp.int32, (1, tile_d), 1))

    # Parity of XOR_i (bit_i & bit_{(i+2)%n}).  n_wires is static -> unrolled;
    # duplicate pairs (e.g. n_wires == 4) self-cancel via the xor, matching the
    # sequential-CZ reference exactly.
    parity = jnp.zeros_like(col)
    for i in range(n_wires):
        j = (i + 2) % n_wires
        bit_i = (col >> (n_wires - 1 - i)) & 1
        bit_j = (col >> (n_wires - 1 - j)) & 1
        parity = parity ^ (bit_i & bit_j)

    sign = jnp.where(parity == 1, -1.0, 1.0).astype(out_re_ref.dtype)  # (1, tile_d)

    out_re_ref[...] = st_re_ref[...] * sign
    out_im_ref[...] = st_im_ref[...] * sign


@functools.partial(jax.jit, static_argnames=("n_wires",))
def czring(state_re, state_im, n_wires):
    """Apply the CZ ring to a (B, 2**n_wires) state given as (real, imag)."""
    B, D = state_re.shape
    assert D == 2 ** n_wires
    assert n_wires < 31, "int32 basis index"
    assert state_im.shape == (B, D) and state_im.dtype == state_re.dtype
    dtype = state_re.dtype

    # Lane-dense 2 MiB (f32) blocks; cdiv grid masks partial edge blocks so any
    # batch size is safe (no full-dim VMEM-blowing fallback).
    tile_r = B if B <= 256 else 256      # 256 is a multiple of 8/16/32 sublanes
    tile_d = D if D <= 2048 else 2048    # D is a power of two -> exact tiling
    grid = (pl.cdiv(B, tile_r), pl.cdiv(D, tile_d))

    kernel = functools.partial(czring_kernel, n_wires=n_wires, tile_d=tile_d)
    spec = pl.BlockSpec((tile_r, tile_d), lambda i, j: (i, j))

    out_re, out_im = pl.pallas_call(
        kernel,
        out_shape=(jax.ShapeDtypeStruct((B, D), dtype),
                   jax.ShapeDtypeStruct((B, D), dtype)),
        grid=grid,
        in_specs=[spec, spec],
        out_specs=(spec, spec),
        compiler_params=pltpu.CompilerParams(
            dimension_semantics=("parallel", "parallel")),
    )(state_re, state_im)

    return out_re, out_im


def czring_reference(state_c, n_wires):
    """Plain-JAX reference mirroring the torchquantum loop: apply CZ on
    wires [i, (i+2)%n] sequentially to the (B, 2, 2, ..., 2) state."""
    B = state_c.shape[0]
    st = state_c.reshape((B,) + (2,) * n_wires)
    for i in range(n_wires):
        j = (i + 2) % n_wires
        bit = jnp.arange(2)
        bi = bit.reshape((1,) + tuple(2 if k == i else 1 for k in range(n_wires)))
        bj = bit.reshape((1,) + tuple(2 if k == j else 1 for k in range(n_wires)))
        sign = jnp.where((bi * bj) == 1, -1.0, 1.0).astype(jnp.float32)
        st = st * sign
    return st.reshape(B, 2 ** n_wires)


def _run_case(key, n_wires, batch):
    dim = 2 ** n_wires
    kre, kim = jax.random.split(key)
    re = jax.random.normal(kre, (batch, dim), dtype=jnp.float32)
    im = jax.random.normal(kim, (batch, dim), dtype=jnp.float32)
    norm = jnp.sqrt(jnp.sum(re * re + im * im, axis=-1, keepdims=True))
    re = re / norm
    im = im / norm

    ref = czring_reference(re + 1j * im, n_wires)

    out_re, out_im = czring(re, im, n_wires)
    jax.block_until_ready((out_re, out_im))

    assert jnp.allclose(out_re, jnp.real(ref), atol=1e-6), (n_wires, batch)
    assert jnp.allclose(out_im, jnp.imag(ref), atol=1e-6), (n_wires, batch)


if __name__ == "__main__":
    key = jax.random.PRNGKey(0)
    k1, k2 = jax.random.split(key)

    # small demo shape (single-block path): batch=2, n_wires=8 -> D=256
    _run_case(k1, n_wires=8, batch=2)

    # larger shape exercising the tiled / pipelined path: batch=8, D=4096
    _run_case(k2, n_wires=12, batch=8)

    print("KERNEL_OK")
</pallas_src>

<mosaic_0001>
module attributes {stable_mosaic.version = 11 : i64} {
  func.func @czring_kernel(%arg0: i32, %arg1: i32, %arg2: memref<2x256xf32, #tpu.memory_space<vmem>>, %arg3: memref<2x256xf32, #tpu.memory_space<vmem>>, %arg4: memref<2x256xf32, #tpu.memory_space<vmem>>, %arg5: memref<2x256xf32, #tpu.memory_space<vmem>>) attributes {dimension_semantics = [#tpu.dimension_semantics<parallel>, #tpu.dimension_semantics<parallel>], iteration_bounds = array<i64: 1, 1>, scalar_prefetch = 0 : i64, scratch_operands = 0 : i64, tpu.core_type = #tpu.core_type<tc>, window_params = [{transform_indices = @transform_0, window_bounds = array<i64: 2, 256>}, {transform_indices = @transform_1, window_bounds = array<i64: 2, 256>}, {transform_indices = @transform_2, window_bounds = array<i64: 2, 256>}, {transform_indices = @transform_3, window_bounds = array<i64: 2, 256>}]} {
    %c256_i32 = arith.constant 256 : i32
    %0 = arith.muli %arg1, %c256_i32 : i32
    %1 = tpu.iota {dimensions = array<i32: 1>} : vector<1x256xi32>
    %2 = vector.broadcast %0 : i32 to vector<1x256xi32>
    %3 = arith.addi %2, %1 : vector<1x256xi32>
    %c0_i32 = arith.constant 0 : i32
    %4 = vector.broadcast %c0_i32 : i32 to vector<1x256xi32>
    %c7_i32 = arith.constant 7 : i32
    %5 = vector.broadcast %c7_i32 : i32 to vector<1x256xi32>
    %6 = arith.shrsi %3, %5 : vector<1x256xi32>
    %c1_i32 = arith.constant 1 : i32
    %7 = vector.broadcast %c1_i32 : i32 to vector<1x256xi32>
    %8 = arith.andi %6, %7 : vector<1x256xi32>
    %c5_i32 = arith.constant 5 : i32
    %9 = vector.broadcast %c5_i32 : i32 to vector<1x256xi32>
    %10 = arith.shrsi %3, %9 : vector<1x256xi32>
    %c1_i32_0 = arith.constant 1 : i32
    %11 = vector.broadcast %c1_i32_0 : i32 to vector<1x256xi32>
    %12 = arith.andi %10, %11 : vector<1x256xi32>
    %13 = arith.andi %8, %12 : vector<1x256xi32>
    %14 = arith.xori %4, %13 : vector<1x256xi32>
    %c6_i32 = arith.constant 6 : i32
    %15 = vector.broadcast %c6_i32 : i32 to vector<1x256xi32>
    %16 = arith.shrsi %3, %15 : vector<1x256xi32>
    %c1_i32_1 = arith.constant 1 : i32
    %17 = vector.broadcast %c1_i32_1 : i32 to vector<1x256xi32>
    %18 = arith.andi %16, %17 : vector<1x256xi32>
    %c4_i32 = arith.constant 4 : i32
    %19 = vector.broadcast %c4_i32 : i32 to vector<1x256xi32>
    %20 = arith.shrsi %3, %19 : vector<1x256xi32>
    %c1_i32_2 = arith.constant 1 : i32
    %21 = vector.broadcast %c1_i32_2 : i32 to vector<1x256xi32>
    %22 = arith.andi %20, %21 : vector<1x256xi32>
    %23 = arith.andi %18, %22 : vector<1x256xi32>
    %24 = arith.xori %14, %23 : vector<1x256xi32>
    %c5_i32_3 = arith.constant 5 : i32
    %25 = vector.broadcast %c5_i32_3 : i32 to vector<1x256xi32>
    %26 = arith.shrsi %3, %25 : vector<1x256xi32>
    %c1_i32_4 = arith.constant 1 : i32
    %27 = vector.broadcast %c1_i32_4 : i32 to vector<1x256xi32>
    %28 = arith.andi %26, %27 : vector<1x256xi32>
    %c3_i32 = arith.constant 3 : i32
    %29 = vector.broadcast %c3_i32 : i32 to vector<1x256xi32>
    %30 = arith.shrsi %3, %29 : vector<1x256xi32>
    %c1_i32_5 = arith.constant 1 : i32
    %31 = vector.broadcast %c1_i32_5 : i32 to vector<1x256xi32>
    %32 = arith.andi %30, %31 : vector<1x256xi32>
    %33 = arith.andi %28, %32 : vector<1x256xi32>
    %34 = arith.xori %24, %33 : vector<1x256xi32>
    %c4_i32_6 = arith.constant 4 : i32
    %35 = vector.broadcast %c4_i32_6 : i32 to vector<1x256xi32>
    %36 = arith.shrsi %3, %35 : vector<1x256xi32>
    %c1_i32_7 = arith.constant 1 : i32
    %37 = vector.broadcast %c1_i32_7 : i32 to vector<1x256xi32>
    %38 = arith.andi %36, %37 : vector<1x256xi32>
    %c2_i32 = arith.constant 2 : i32
    %39 = vector.broadcast %c2_i32 : i32 to vector<1x256xi32>
    %40 = arith.shrsi %3, %39 : vector<1x256xi32>
    %c1_i32_8 = arith.constant 1 : i32
    %41 = vector.broadcast %c1_i32_8 : i32 to vector<1x256xi32>
    %42 = arith.andi %40, %41 : vector<1x256xi32>
    %43 = arith.andi %38, %42 : vector<1x256xi32>
    %44 = arith.xori %34, %43 : vector<1x256xi32>
    %c3_i32_9 = arith.constant 3 : i32
    %45 = vector.broadcast %c3_i32_9 : i32 to vector<1x256xi32>
    %46 = arith.shrsi %3, %45 : vector<1x256xi32>
    %c1_i32_10 = arith.constant 1 : i32
    %47 = vector.broadcast %c1_i32_10 : i32 to vector<1x256xi32>
    %48 = arith.andi %46, %47 : vector<1x256xi32>
    %c1_i32_11 = arith.constant 1 : i32
    %49 = vector.broadcast %c1_i32_11 : i32 to vector<1x256xi32>
    %50 = arith.shrsi %3, %49 : vector<1x256xi32>
    %c1_i32_12 = arith.constant 1 : i32
    %51 = vector.broadcast %c1_i32_12 : i32 to vector<1x256xi32>
    %52 = arith.andi %50, %51 : vector<1x256xi32>
    %53 = arith.andi %48, %52 : vector<1x256xi32>
    %54 = arith.xori %44, %53 : vector<1x256xi32>
    %c2_i32_13 = arith.constant 2 : i32
    %55 = vector.broadcast %c2_i32_13 : i32 to vector<1x256xi32>
    %56 = arith.shrsi %3, %55 : vector<1x256xi32>
    %c1_i32_14 = arith.constant 1 : i32
    %57 = vector.broadcast %c1_i32_14 : i32 to vector<1x256xi32>
    %58 = arith.andi %56, %57 : vector<1x256xi32>
    %c0_i32_15 = arith.constant 0 : i32
    %59 = vector.broadcast %c0_i32_15 : i32 to vector<1x256xi32>
    %60 = arith.shrsi %3, %59 : vector<1x256xi32>
    %c1_i32_16 = arith.constant 1 : i32
    %61 = vector.broadcast %c1_i32_16 : i32 to vector<1x256xi32>
    %62 = arith.andi %60, %61 : vector<1x256xi32>
    %63 = arith.andi %58, %62 : vector<1x256xi32>
    %64 = arith.xori %54, %63 : vector<1x256xi32>
    %c1_i32_17 = arith.constant 1 : i32
    %65 = vector.broadcast %c1_i32_17 : i32 to vector<1x256xi32>
    %66 = arith.shrsi %3, %65 : vector<1x256xi32>
    %c1_i32_18 = arith.constant 1 : i32
    %67 = vector.broadcast %c1_i32_18 : i32 to vector<1x256xi32>
    %68 = arith.andi %66, %67 : vector<1x256xi32>
    %c7_i32_19 = arith.constant 7 : i32
    %69 = vector.broadcast %c7_i32_19 : i32 to vector<1x256xi32>
    %70 = arith.shrsi %3, %69 : vector<1x256xi32>
    %c1_i32_20 = arith.constant 1 : i32
    %71 = vector.broadcast %c1_i32_20 : i32 to vector<1x256xi32>
    %72 = arith.andi %70, %71 : vector<1x256xi32>
    %73 = arith.andi %68, %72 : vector<1x256xi32>
    %74 = arith.xori %64, %73 : vector<1x256xi32>
    %c0_i32_21 = arith.constant 0 : i32
    %75 = vector.broadcast %c0_i32_21 : i32 to vector<1x256xi32>
    %76 = arith.shrsi %3, %75 : vector<1x256xi32>
    %c1_i32_22 = arith.constant 1 : i32
    %77 = vector.broadcast %c1_i32_22 : i32 to vector<1x256xi32>
    %78 = arith.andi %76, %77 : vector<1x256xi32>
    %c6_i32_23 = arith.constant 6 : i32
    %79 = vector.broadcast %c6_i32_23 : i32 to vector<1x256xi32>
    %80 = arith.shrsi %3, %79 : vector<1x256xi32>
    %c1_i32_24 = arith.constant 1 : i32
    %81 = vector.broadcast %c1_i32_24 : i32 to vector<1x256xi32>
    %82 = arith.andi %80, %81 : vector<1x256xi32>
    %83 = arith.andi %78, %82 : vector<1x256xi32>
    %84 = arith.xori %74, %83 : vector<1x256xi32>
    %c1_i32_25 = arith.constant 1 : i32
    %85 = vector.broadcast %c1_i32_25 : i32 to vector<1x256xi32>
    %86 = arith.cmpi eq, %84, %85 : vector<1x256xi32>
    %cst = arith.constant -1.000000e+00 : f32
    %cst_26 = arith.constant 1.000000e+00 : f32
    %87 = vector.broadcast %cst : f32 to vector<1x256xf32>
    %88 = vector.broadcast %cst_26 : f32 to vector<1x256xf32>
    %89 = arith.select %86, %87, %88 : vector<1x256xi1>, vector<1x256xf32>
    %c0 = arith.constant 0 : index
    %c0_27 = arith.constant 0 : index
    %90 = vector.load %arg2[%c0, %c0_27] : memref<2x256xf32, #tpu.memory_space<vmem>>, vector<2x256xf32>
    %91 = vector.broadcast %89 : vector<1x256xf32> to vector<2x256xf32>
    %92 = arith.mulf %90, %91 : vector<2x256xf32>
    %c0_28 = arith.constant 0 : index
    %c0_29 = arith.constant 0 : index
    %93 = vector.load %arg4[%c0_28, %c0_29] : memref<2x256xf32, #tpu.memory_space<vmem>>, vector<2x256xf32>
    tpu.vector_store %arg4[%c0_28, %c0_29], %92 {strides = array<i32>} : memref<2x256xf32, #tpu.memory_space<vmem>>, vector<2x256xf32>,
    %c0_30 = arith.constant 0 : index
    %c0_31 = arith.constant 0 : index
    %94 = vector.load %arg3[%c0_30, %c0_31] : memref<2x256xf32, #tpu.memory_space<vmem>>, vector<2x256xf32>
    %95 = vector.broadcast %89 : vector<1x256xf32> to vector<2x256xf32>
    %96 = arith.mulf %94, %95 : vector<2x256xf32>
    %c0_32 = arith.constant 0 : index
    %c0_33 = arith.constant 0 : index
    %97 = vector.load %arg5[%c0_32, %c0_33] : memref<2x256xf32, #tpu.memory_space<vmem>>, vector<2x256xf32>
    tpu.vector_store %arg5[%c0_32, %c0_33], %96 {strides = array<i32>} : memref<2x256xf32, #tpu.memory_space<vmem>>, vector<2x256xf32>,
    return
  }
  func.func @transform_0(%arg0: i32, %arg1: i32) -> (i32, i32) {
    %c0_i32 = arith.constant 0 : i32
    return %arg0, %arg1 : i32, i32
  }
  func.func @transform_1(%arg0: i32, %arg1: i32) -> (i32, i32) {
    %c0_i32 = arith.constant 0 : i32
    return %arg0, %arg1 : i32, i32
  }
  func.func @transform_2(%arg0: i32, %arg1: i32) -> (i32, i32) {
    %c0_i32 = arith.constant 0 : i32
    return %arg0, %arg1 : i32, i32
  }
  func.func @transform_3(%arg0: i32, %arg1: i32) -> (i32, i32) {
    %c0_i32 = arith.constant 0 : i32
    return %arg0, %arg1 : i32, i32
  }
}

</mosaic_0001>

<bundles_post_ra>
// kernel: czring.1
= control target key start
LH: loop header
LB: loop body
LE: loop exit
PB: predicated region body
PF: predicated region fallthrough
CT: control target
= control target key end

     0   :  { %9 = vsyncpa [#allocation3], 0  ;;  %s291_s0 = inlined_call_operand.hbm [shape: f32[2,256], index: 0, kind: input, shape index: {}]   ;;  %s292_s1 = inlined_call_operand.hbm [shape: f32[2,256], index: 1, kind: input, shape index: {}]   ;;  %s293_s2 = inlined_call_operand.hbm [shape: f32[2,256], index: 2, kind: output, shape index: {0}]   ;;  %s294_s3 = inlined_call_operand.hbm [shape: f32[2,256], index: 3, kind: output, shape index: {1}]  }
   0x1   :  { %10 = vsyncpa [#allocation6], 0 }
   0x2   :  { %11 = vsyncpa [#allocation4], 0 }
   0x3   :  { %12 = vsyncpa [#allocation9], 0  ;;  %s251_s12 = smov [#allocation2]   ;;  %s252_s14 = smov [#allocation5]  }
   0x4   :  { %s19_s13 = sshll.u32 %s251_s12, 4  ;;  %s29_s15 = sshll.u32 %s252_s14, 4  ;;  %s20_s13 = int_to_ptr.vmem [resolvable:$true] %s19_s13  ;;  %s30_s15 = int_to_ptr.vmem [resolvable:$true] %s29_s15 }
   0x5   :  { %s171_s16 = scalar_lea.vmem %s20_s13, 64  ;;  %p176_p1 = scmp.lt.s32.totalorder %s20_s13, %s20_s13 }
   0x6   :  { %p172_p0 = scmp.ne.s32.totalorder %s20_s13, %s171_s16  ;;  %p177_p2 = scmp.lt.s32.totalorder %s171_s16, %s171_s16 }
   0x8   :  { %p178_p3 = por %p177_p2, %p176_p1 }
   0xa   :  { %p179_p4 = pnand %p178_p3, %p172_p0 }
   0xc   :  { %182 = shalt.err (!%p179_p4)
}
   0xd   :  { %22 = dma.hbm_to_vmem [thread:$0]  %s291_s0, 64, %s20_s13, [#allocation3]  }
   0xe   :  { %s191_s19 = scalar_lea.vmem %s30_s15, 64  ;;  %p196_p6 = scmp.lt.s32.totalorder %s30_s15, %s30_s15 }
   0xf   :  { %p192_p5 = scmp.ne.s32.totalorder %s30_s15, %s191_s19  ;;  %p197_p7 = scmp.lt.s32.totalorder %s191_s19, %s191_s19 }
  0x11   :  { %p198_p8 = por %p197_p7, %p196_p6 }
  0x13   :  { %p199_p9 = pnand %p198_p8, %p192_p5 }
  0x15   :  { %202 = shalt.err (!%p199_p9)
}
  0x16   :  { %32 = dma.hbm_to_vmem [thread:$0]  %s292_s1, 64, %s30_s15, [#allocation6]  }
  0x17   :  { %243 = dma.done.wait [#allocation3], 64  }
  0x18   :  { %244 = vsyncadd [#allocation3], 4294967232 }
  0x19   :  { %245 = dma.done.wait [#allocation6], 64  }
  0x1a   :  { %246 = vsyncadd [#allocation6], 4294967232  ;;  %v40_v0 = vlaneseq  ;;  %v253_v53 = vmov 1983009808   ;;  %s255_s0 = smov [#allocation7]   ;;  %s256_s22 = smov [#allocation8]  }
  0x1b   :  { %v115_v54 = vunpack.c.l.s4 %v253_v53  ;;  %s133_s1 = sshll.u32 %s255_s0, 4  ;;  %s143_s23 = sshll.u32 %s256_s22, 4  ;;  %s134_s1 = int_to_ptr.vmem [resolvable:$true] %s133_s1  ;;  %s144_s23 = int_to_ptr.vmem [resolvable:$true] %s143_s23 }
  0x1c   :  { %v41_v1 = vand.u32 127, %v40_v0  ;;  %s203_s24 = scalar_lea.vmem %s134_s1, 64  ;;  %p208_p11 = scmp.lt.s32.totalorder %s134_s1, %s134_s1 }
  0x1d   :  { %p204_p10 = scmp.ne.s32.totalorder %s134_s1, %s203_s24  ;;  %p209_p12 = scmp.lt.s32.totalorder %s203_s24, %s203_s24 }
  0x1e   :  { %v42_v2 = vadd.s32 128, %v41_v1  ;;  %v46_v3 = vshra.s32 %v41_v1, 7  ;;  %v50_v4 = vshra.s32 %v41_v1, 5  ;;  %v56_v5 = vshra.s32 %v41_v1, 6 }
  0x1f   :  { %v60_v6 = vshra.s32 %v41_v1, 4  ;;  %v68_v7 = vshra.s32 %v41_v1, 3  ;;  %v76_v8 = vshra.s32 %v41_v1, 2  ;;  %v84_v9 = vshra.s32 %v41_v1, 1  ;;  %p210_p13 = por %p209_p12, %p208_p11 }
  0x20   :  { %v47_v10 = vshra.s32 %v42_v2, 7  ;;  %v48_v11 = vand.u32 1, %v46_v3  ;;  %v51_v12 = vshra.s32 %v42_v2, 5  ;;  %v52_v13 = vand.u32 1, %v50_v4 }
  0x21   :  { %v57_v14 = vshra.s32 %v42_v2, 6  ;;  %v58_v15 = vand.u32 1, %v56_v5  ;;  %v61_v16 = vshra.s32 %v42_v2, 4  ;;  %v62_v17 = vand.u32 1, %v60_v6  ;;  %p211_p0 = pnand %p210_p13, %p204_p10 }
  0x22   :  { %v49_v18 = vand.u32 1, %v47_v10  ;;  %v53_v19 = vand.u32 1, %v51_v12  ;;  %v54_v20 = vand.u32 %v52_v13, %v48_v11  ;;  %v69_v21 = vshra.s32 %v42_v2, 3  ;;  %v124_v10 = vld [vmem:[#allocation5] sm:$0xf] }
  0x23   :  { %v59_v22 = vand.u32 1, %v57_v14  ;;  %v63_v23 = vand.u32 1, %v61_v16  ;;  %v64_v24 = vand.u32 %v62_v17, %v58_v15  ;;  %v70_v25 = vand.u32 1, %v68_v7 }
  0x24   :  { %v55_v26 = vand.u32 %v53_v19, %v49_v18  ;;  %v71_v27 = vand.u32 1, %v69_v21  ;;  %v77_v28 = vshra.s32 %v42_v2, 2  ;;  %v78_v29 = vand.u32 1, %v76_v8 }
  0x25   :  { %v65_v30 = vand.u32 %v63_v23, %v59_v22  ;;  %v66_v31 = vxor.u32 %v64_v24, %v54_v20  ;;  %v72_v32 = vand.u32 %v70_v25, %v52_v13  ;;  %v85_v33 = vshra.s32 %v42_v2, 1 }
  0x26   :  { %v73_v34 = vand.u32 %v71_v27, %v53_v19  ;;  %v79_v35 = vand.u32 1, %v77_v28  ;;  %v80_v36 = vand.u32 %v78_v29, %v62_v17  ;;  %v86_v37 = vand.u32 1, %v84_v9  ;;  %v110_v9 = vld [vmem:[#allocation2] sm:$0xf] }
  0x27   :  { %v67_v38 = vxor.u32 %v65_v30, %v55_v26  ;;  %v74_v39 = vxor.u32 %v72_v32, %v66_v31  ;;  %v87_v40 = vand.u32 1, %v85_v33  ;;  %v92_v41 = vand.u32 1, %v41_v1 }
  0x28   :  { %v81_v42 = vand.u32 %v79_v35, %v63_v23  ;;  %v88_v43 = vand.u32 %v86_v37, %v70_v25  ;;  %v93_v44 = vand.u32 1, %v42_v2  ;;  %v98_v52 = vand.u32 %v86_v37, %v48_v11 }
  0x29   :  { %v75_v45 = vxor.u32 %v73_v34, %v67_v38  ;;  %v82_v46 = vxor.u32 %v80_v36, %v74_v39  ;;  %v89_v47 = vand.u32 %v87_v40, %v71_v27  ;;  %v94_v48 = vand.u32 %v92_v41, %v78_v29 }
  0x2a   :  { %v95_v51 = vand.u32 %v93_v44, %v79_v35  ;;  %v99_v57 = vand.u32 %v87_v40, %v49_v18  ;;  %v102_v58 = vand.u32 %v92_v41, %v58_v15  ;;  %v103_v61 = vand.u32 %v93_v44, %v59_v22 }
  0x2b   :  { %v83_v49 = vxor.u32 %v81_v42, %v75_v45  ;;  %v90_v50 = vxor.u32 %v88_v43, %v82_v46  ;;  %v116_v1 = vunpack.c.0.s8 %v115_v54  ;;  %v118_v2 = vshrl.u32 %v40_v0, 7 }
  0x2c   :  { %v254_v4 = vmov 1.0  }
  0x2d   :  { %v91_v55 = vxor.u32 %v89_v47, %v83_v49  ;;  %v96_v56 = vxor.u32 %v94_v48, %v90_v50  ;;  %v119_v6 = vsub.s32 %v116_v1, %v118_v2 }
  0x2f   :  { %v97_v59 = vxor.u32 %v95_v51, %v91_v55  ;;  %v100_v60 = vxor.u32 %v98_v52, %v96_v56 }
  0x31   :  { %v101_v62 = vxor.u32 %v99_v57, %v97_v59  ;;  %v104_v63 = vxor.u32 %v102_v58, %v100_v60 }
  0x33   :  { %v105_v3 = vxor.u32 %v103_v61, %v101_v62  ;;  %vm106_vm0 = vcmp.eq.s32.totalorder %v104_v63, 1 }
  0x34   :  { %v108_v5 = vsel %vm106_vm0, -1.0, %v254_v4 }
  0x35   :  { %vm107_vm1 = vcmp.eq.s32.totalorder %v105_v3, 1 }
  0x36   :  { %v109_v7 = vsel %vm107_vm1, -1.0, %v254_v4 }
  0x37   :  { %v113_v8 = vcombine.low %v108_v5, %v109_v7 }
  0x39   :  { %v120_v11 = vrot.slane %v113_v8, %v119_v6 }
  0x3b   :  { %v122_v12 = vmul.f32 %v120_v11, %v110_v9  ;;  %v125_v13 = vmul.f32 %v124_v10, %v120_v11 }
  0x3d   :  { %123 = vst [vmem:[#allocation7] sm:$0xf] %v122_v12  ;;  %126 = vst [vmem:[#allocation8] sm:$0xf] %v125_v13 }
  0x3e   :  { %214 = shalt.err (!%p211_p0)
}
  0x3f   :  { %136 = dma.vmem_to_hbm [thread:$0]  %s134_s1, 64, %s293_s2, [#allocation4]  }
  0x40   :  { %s223_s27 = scalar_lea.vmem %s144_s23, 64  ;;  %p228_p2 = scmp.lt.s32.totalorder %s144_s23, %s144_s23 }
  0x41   :  { %p224_p1 = scmp.ne.s32.totalorder %s144_s23, %s223_s27  ;;  %p229_p3 = scmp.lt.s32.totalorder %s223_s27, %s223_s27 }
  0x43   :  { %p230_p4 = por %p229_p3, %p228_p2 }
  0x45   :  { %p231_p5 = pnand %p230_p4, %p224_p1 }
  0x47   :  { %234 = shalt.err (!%p231_p5)
}
  0x48   :  { %146 = dma.vmem_to_hbm [thread:$0]  %s144_s23, 64, %s294_s3, [#allocation9]  }
  0x49   :  { %247 = dma.done.wait [#allocation4], 64  }
  0x4a   :  { %248 = vsyncadd [#allocation4], 4294967232 }
  0x4b   :  { %249 = dma.done.wait [#allocation9], 64  }
  0x4c   :  { %250 = vsyncadd [#allocation9], 4294967232 }
  0x4d   :  { %153 = vsyncpa [#allocation3], 1 }
  0x4e   :  { %154 = vsyncpa [#allocation6], 1 }
  0x4f   :  { %155 = vsyncpa [#allocation4], 1 }
  0x50   :  { %156 = vsyncpa [#allocation9], 1 }

</bundles_post_ra>
